<compile_context>
chip_gen: v6e
topology: v6e:2x2x1
jax: 0.10.0
libtpu: 0.0.40
codegen_flags: <defaults>
</compile_context>

<pallas_src>
import jax
import jax.numpy as jnp
from jax.experimental import pallas as pl
from jax.experimental.pallas import tpu as pltpu

_SUBLANES = 8
_LANES = 128


def _scale_kernel(w_ref, x_ref, o_ref):
    # w_ref: (1,) scalar weight in SMEM (same dtype as x); x/o: lane-dense tiles.
    o_ref[...] = x_ref[...] * w_ref[0]


def _vmem_budget():
    """(per-tile byte cap, vmem_limit_bytes) tuned per TPU generation."""
    try:
        cap = pltpu.get_tpu_info().vmem_capacity_bytes
    except Exception:
        cap = 64 << 20  # assume the smallest (v7x-like) VMEM if query fails
    if cap >= (96 << 20):
        # v5e / v6e: 128 MiB physical VMEM -> bigger tiles amortize step overhead.
        return 8 << 20, 64 << 20
    # v7x: 64 MiB physical (32 MiB scoped default) -> 4 MiB tiles, <=48 MiB limit.
    return 4 << 20, 48 << 20


def conv1d_1x1_noBias(x, weight):
    """nn.Conv1d(1, 1, kernel_size=1, bias=False) forward.

    x:      (N, 1, L)
    weight: (1, 1, 1) (PyTorch Conv1d weight layout) or any 1-element array
    returns (N, 1, L) with y = weight * x
    """
    orig_shape = x.shape
    # Keep compute / store in the input dtype (no f32 promotion of the tile).
    w_s = jnp.asarray(weight).reshape(-1)[0:1].astype(x.dtype)

    # --- Lane-dense layout: flatten and pad to an (8, 128)-aligned slab. ---
    flat = x.reshape(-1)
    total = flat.shape[0]
    itemsize = jnp.dtype(x.dtype).itemsize

    # Wide lanes for large inputs (unmasked full-width stores); minimal pad
    # for tiny inputs.
    cols = _LANES if total <= _SUBLANES * _LANES else 8 * _LANES
    rows = pl.cdiv(total, cols)
    rows = ((rows + _SUBLANES - 1) // _SUBLANES) * _SUBLANES  # sublane-align
    padded_total = rows * cols
    if padded_total != total:
        flat = jnp.pad(flat, (0, padded_total - total))
    x2 = flat.reshape(rows, cols)

    # --- Row tiling: multiple-of-8 tiles under the per-generation byte cap;
    #     prefer an even grid so v7x's two TensorCores split evenly. ---
    tile_cap_bytes, vmem_limit = _vmem_budget()
    bytes_per_row = cols * itemsize
    max_tile_rows = max(_SUBLANES,
                        (tile_cap_bytes // bytes_per_row) // _SUBLANES * _SUBLANES)
    limit = min(rows, max_tile_rows)
    candidates = [t for t in range(_SUBLANES, limit + 1, _SUBLANES) if rows % t == 0]
    even = [t for t in candidates if (rows // t) % 2 == 0]
    row_tile = max(even) if even else max(candidates)
    grid_rows = rows // row_tile

    out2 = pl.pallas_call(
        _scale_kernel,
        out_shape=jax.ShapeDtypeStruct((rows, cols), x.dtype),
        grid=(grid_rows,),
        in_specs=[
            pl.BlockSpec(memory_space=pltpu.MemorySpace.SMEM),   # weight scalar
            pl.BlockSpec((row_tile, cols), lambda i: (i, 0)),    # x tile
        ],
        out_specs=pl.BlockSpec((row_tile, cols), lambda i: (i, 0)),
        compiler_params=pltpu.CompilerParams(
            dimension_semantics=("parallel",),
            vmem_limit_bytes=vmem_limit,
        ),
    )(w_s, x2)

    return out2.reshape(-1)[:total].reshape(orig_shape)


if __name__ == "__main__":
    key = jax.random.PRNGKey(0)

    # Small shapes consistent with the module: batch=2, channels=1, length=16.
    N, C, L = 2, 1, 16
    x = jax.random.normal(key, (N, C, L), dtype=jnp.float32)

    # Conv1d weight shape (out_channels=1, in_channels=1, kernel_size=1);
    # init_weights() sets every element to 2.0; bias=False.
    weight = jnp.full((1, 1, 1), 2.0, dtype=jnp.float32)

    out = conv1d_1x1_noBias(x, weight)
    out = jax.block_until_ready(out)

    # Pure-JAX reference for the 1x1, single-channel, bias-free conv.
    ref = x * 2.0
    assert out.shape == (N, C, L)
    assert jnp.allclose(out, ref, atol=1e-6, rtol=1e-6)

    print("KERNEL_OK")
</pallas_src>

<mosaic_0001>
module attributes {stable_mosaic.version = 11 : i64} {
  func.func @_scale_kernel(%arg0: i32, %arg1: memref<1xf32, #tpu.memory_space<smem>>, %arg2: memref<8x128xf32, #tpu.memory_space<vmem>>, %arg3: memref<8x128xf32, #tpu.memory_space<vmem>>) attributes {dimension_semantics = [#tpu.dimension_semantics<parallel>], iteration_bounds = array<i64: 1>, scalar_prefetch = 0 : i64, scratch_operands = 0 : i64, tpu.core_type = #tpu.core_type<tc>, window_params = [{transform_indices = @transform_0, window_bounds = array<i64: 1>}, {transform_indices = @transform_1, window_bounds = array<i64: 8, 128>}, {transform_indices = @transform_2, window_bounds = array<i64: 8, 128>}]} {
    %c0 = arith.constant 0 : index
    %c0_0 = arith.constant 0 : index
    %0 = vector.load %arg2[%c0, %c0_0] : memref<8x128xf32, #tpu.memory_space<vmem>>, vector<8x128xf32>
    %c0_1 = arith.constant 0 : index
    %1 = memref.load %arg1[%c0_1] : memref<1xf32, #tpu.memory_space<smem>>
    %2 = vector.broadcast %1 : f32 to vector<8x128xf32>
    %3 = arith.mulf %0, %2 : vector<8x128xf32>
    %c0_2 = arith.constant 0 : index
    %c0_3 = arith.constant 0 : index
    %4 = vector.load %arg3[%c0_2, %c0_3] : memref<8x128xf32, #tpu.memory_space<vmem>>, vector<8x128xf32>
    tpu.vector_store %arg3[%c0_2, %c0_3], %3 {strides = array<i32>} : memref<8x128xf32, #tpu.memory_space<vmem>>, vector<8x128xf32>,
    return
  }
  func.func @transform_0(%arg0: i32) -> i32 {
    %c0_i32 = arith.constant 0 : i32
    %c0_i32_0 = arith.constant 0 : i32
    return %c0_i32 : i32
  }
  func.func @transform_1(%arg0: i32) -> (i32, i32) {
    %c0_i32 = arith.constant 0 : i32
    %c0_i32_0 = arith.constant 0 : i32
    return %arg0, %c0_i32 : i32, i32
  }
  func.func @transform_2(%arg0: i32) -> (i32, i32) {
    %c0_i32 = arith.constant 0 : i32
    %c0_i32_0 = arith.constant 0 : i32
    return %arg0, %c0_i32 : i32, i32
  }
}

</mosaic_0001>

<bundles_post_ra>
// kernel: tpu_custom_call.1
= control target key start
LH: loop header
LB: loop body
LE: loop exit
PB: predicated region body
PF: predicated region fallthrough
CT: control target
= control target key end

     0   :  { %8 = vsyncpa [#allocation4], 0  ;;  %s117_s0 = inlined_call_operand.<no memory space> [shape: f32[1], index: 0, kind: input, shape index: {}]   ;;  %s118_s1 = inlined_call_operand.hbm [shape: f32[8,128], index: 1, kind: input, shape index: {}]   ;;  %s119_s2 = inlined_call_operand.hbm [shape: f32[8,128], index: 2, kind: output, shape index: {}]  }
   0x1   :  { %9 = vsyncpa [#allocation5], 0  ;;  %s91_s9 = smov [#allocation3]  }
   0x2   :  { %s18_s10 = sshll.u32 %s91_s9, 4  ;;  %s19_s10 = int_to_ptr.vmem [resolvable:$true] %s18_s10 }
   0x3   :  { %s55_s11 = scalar_lea.vmem %s19_s10, 128  ;;  %p60_p1 = scmp.lt.s32.totalorder %s19_s10, %s19_s10 }
   0x4   :  { %p56_p0 = scmp.ne.s32.totalorder %s19_s10, %s55_s11  ;;  %p61_p2 = scmp.lt.s32.totalorder %s55_s11, %s55_s11 }
   0x6   :  { %p62_p3 = por %p61_p2, %p60_p1 }
   0x8   :  { %p63_p4 = pnand %p62_p3, %p56_p0 }
   0xa   :  { %66 = shalt.err (!%p63_p4)
}
   0xb   :  { %21 = dma.hbm_to_vmem [thread:$0]  %s118_s1, 128, %s19_s10, [#allocation4]  }
   0xc   :  { %87 = dma.done.wait [#allocation4], 128  }
   0xd   :  { %88 = vsyncadd [#allocation4], 4294967168  ;;  %v27_v0 = vstv %s117_s0  ;;  %s92_s16 = smov [#allocation6]   ;;  %v25_v1 = vld [vmem:[#allocation3] sm:$0xff] }
   0xe   :  { %s36_s17 = sshll.u32 %s92_s16, 4  ;;  %v28_v2 = vmul.f32 %v27_v0, %v25_v1  ;;  %s37_s17 = int_to_ptr.vmem [resolvable:$true] %s36_s17 }
   0xf   :  { %s67_s18 = scalar_lea.vmem %s37_s17, 128  ;;  %p72_p6 = scmp.lt.s32.totalorder %s37_s17, %s37_s17 }
  0x10   :  { %29 = vst [vmem:[#allocation6] sm:$0xff] %v28_v2  ;;  %p68_p5 = scmp.ne.s32.totalorder %s37_s17, %s67_s18  ;;  %p73_p7 = scmp.lt.s32.totalorder %s67_s18, %s67_s18 }
  0x12   :  { %p74_p8 = por %p73_p7, %p72_p6 }
  0x14   :  { %p75_p9 = pnand %p74_p8, %p68_p5 }
  0x16   :  { %78 = shalt.err (!%p75_p9)
}
  0x17   :  { %39 = dma.vmem_to_hbm [thread:$0]  %s37_s17, 128, %s119_s2, [#allocation5]  }
  0x18   :  { %89 = dma.done.wait [#allocation5], 128  }
  0x19   :  { %90 = vsyncadd [#allocation5], 4294967168 }
  0x1a   :  { %43 = vsyncpa [#allocation4], 1 }
  0x1b   :  { %44 = vsyncpa [#allocation5], 1 }

</bundles_post_ra>
